<compile_context>
chip_gen: v6e
topology: v6e:2x2x1
jax: 0.10.0
libtpu: 0.0.40
codegen_flags: <defaults>
</compile_context>

<pallas_src>
import functools

import jax
import jax.numpy as jnp
from jax.experimental import pallas as pl
from jax.experimental.pallas import tpu as pltpu


def _round_up(n, m):
    return ((n + m - 1) // m) * m


def _cdiv(a, b):
    return -(-a // b)


# --------------------------------------------------------------------------
# Kernel: 4 fused MXU matmuls (fc1, fc2, fc3, [fc41|fc42]) + f32 bias/ReLU.
# Weights and x arrive already in the compute dtype (no per-step casts).
# --------------------------------------------------------------------------
def _make_kernel(h1p, h2p, h3p, headp):
    def kernel(x_ref, w1_ref, w2_ref, w3_ref, w4_ref, b_ref, out_ref):
        cd = x_ref.dtype
        b = b_ref[...]                                    # (4, max_width) f32

        # fc1 + ReLU
        h = jnp.dot(x_ref[...], w1_ref[...], preferred_element_type=jnp.float32)
        h = jnp.maximum(h + b[0:1, :h1p], 0.0)

        # fc2 + ReLU   (fc2_enabled=True)
        h = jnp.dot(h.astype(cd), w2_ref[...], preferred_element_type=jnp.float32)
        h = jnp.maximum(h + b[1:2, :h2p], 0.0)

        # fc3 + ReLU   (fc3_enabled=True)
        h = jnp.dot(h.astype(cd), w3_ref[...], preferred_element_type=jnp.float32)
        h = jnp.maximum(h + b[2:3, :h3p], 0.0)

        # fused heads: [fc41 | fc42] -> lane-dense padded output slab
        y = jnp.dot(h.astype(cd), w4_ref[...], preferred_element_type=jnp.float32)
        out_ref[...] = (y + b[3:4, :headp]).astype(out_ref.dtype)

    return kernel


# --------------------------------------------------------------------------
# Parameter packing: pad feature dims to 128-lane multiples, fuse the two
# heads, stack all biases, and pre-cast weights to the compute dtype.
# --------------------------------------------------------------------------
def pack_params(params, compute_dtype=jnp.bfloat16):
    cd = jnp.dtype(compute_dtype)
    w1, b1 = params["w1"], params["b1"]
    w2, b2 = params["w2"], params["b2"]
    w3, b3 = params["w3"], params["b3"]
    w41, b41 = params["w41"], params["b41"]
    w42, b42 = params["w42"], params["b42"]

    D, H1 = w1.shape
    H2 = w2.shape[1]
    H3 = w3.shape[1]
    O = w41.shape[1]

    Dp = _round_up(max(D, 1), 128)
    H1p = _round_up(H1, 128)
    H2p = _round_up(H2, 128)
    H3p = _round_up(H3, 128)
    Op = _round_up(2 * O, 128)               # fused mu|logvar head width

    def pad2(a, rows, cols):
        return jnp.pad(a, ((0, rows - a.shape[0]), (0, cols - a.shape[1])))

    w4 = jnp.concatenate([w41, w42], axis=1)             # (H3, 2*O)
    b4 = jnp.concatenate([b41, b42], axis=1)             # (1, 2*O)

    W1 = pad2(w1, Dp, H1p).astype(cd)
    W2 = pad2(w2, H1p, H2p).astype(cd)
    W3 = pad2(w3, H2p, H3p).astype(cd)
    W4 = pad2(w4, H3p, Op).astype(cd)

    max_w = max(H1p, H2p, H3p, Op)
    Bstack = jnp.zeros((4, max_w), jnp.float32)          # biases stay f32
    Bstack = Bstack.at[0, :H1].set(b1[0])
    Bstack = Bstack.at[1, :H2].set(b2[0])
    Bstack = Bstack.at[2, :H3].set(b3[0])
    Bstack = Bstack.at[3, :2 * O].set(b4[0])

    return dict(W1=W1, W2=W2, W3=W3, W4=W4, Bstack=Bstack)


# --------------------------------------------------------------------------
# Forward wrapper
# --------------------------------------------------------------------------
@functools.partial(jax.jit, static_argnames=("out_size", "tb_max"))
def vae_encoder_forward(x, packed, *, out_size, tb_max=1024):
    B, D = x.shape
    W1, W2, W3, W4 = packed["W1"], packed["W2"], packed["W3"], packed["W4"]
    Bstack = packed["Bstack"]

    cd = W1.dtype                            # compute dtype (bf16 default / f32)
    Dp, H1p = W1.shape
    H2p = W2.shape[1]
    H3p = W3.shape[1]
    Op = W4.shape[1]

    # ---- Batch tiling ----------------------------------------------------
    # Small batches: a single grid step (pure launch-overhead regime anyway).
    # Larger batches: an even number (>=2) of tiles so both v7x TensorCores
    # get work via dimension_semantics=("parallel",), each tile <= tb_max.
    gran = 16 if cd == jnp.bfloat16 else 8   # sublane packing granularity
    if B <= 256:
        tb = _round_up(max(B, gran), gran)
        n_tiles = 1
    else:
        n_tiles = max(2, _cdiv(B, tb_max))
        n_tiles += n_tiles % 2               # even tile count for megacore balance
        tb = _round_up(_cdiv(B, n_tiles), gran)
    Bp = tb * n_tiles

    xp = x.astype(cd)
    if (Bp, Dp) != (B, D):
        xp = jnp.pad(xp, ((0, Bp - B), (0, Dp - D)))

    kernel = _make_kernel(H1p, H2p, H3p, Op)
    rep = lambda i: (0, 0)                   # weights/biases: same block every step

    itemsize = jnp.dtype(cd).itemsize
    flops = 2 * Bp * (Dp * H1p + H1p * H2p + H2p * H3p + H3p * Op)
    bytes_accessed = (
        Bp * Dp * itemsize                                   # x read
        + (Dp * H1p + H1p * H2p + H2p * H3p + H3p * Op) * itemsize  # weights
        + Bstack.size * 4                                    # biases
        + Bp * Op * itemsize                                 # output slab write
    )

    out = pl.pallas_call(
        kernel,
        grid=(n_tiles,),
        in_specs=[
            pl.BlockSpec((tb, Dp), lambda i: (i, 0)),
            pl.BlockSpec(W1.shape, rep),
            pl.BlockSpec(W2.shape, rep),
            pl.BlockSpec(W3.shape, rep),
            pl.BlockSpec(W4.shape, rep),
            pl.BlockSpec(Bstack.shape, rep),
        ],
        out_specs=pl.BlockSpec((tb, Op), lambda i: (i, 0)),
        out_shape=jax.ShapeDtypeStruct((Bp, Op), cd),
        compiler_params=pltpu.CompilerParams(
            dimension_semantics=("parallel",),
            vmem_limit_bytes=32 * 1024 * 1024,   # safe headroom incl. v5e's 16 MiB default
        ),
        cost_estimate=pl.CostEstimate(
            flops=flops, transcendentals=0, bytes_accessed=bytes_accessed),
    )(xp, W1, W2, W3, W4, Bstack)

    mu = out[:B, :out_size].astype(jnp.float32)
    logvar = out[:B, out_size:2 * out_size].astype(jnp.float32)
    return mu, logvar


# --------------------------------------------------------------------------
# Init (PyTorch nn.Linear default: uniform +-1/sqrt(fan_in)) and pure-JAX reference
# --------------------------------------------------------------------------
def init_params(key, input_size, fc1_size, fc2_size, fc3_size, output_size):
    def linear(k, fan_in, fan_out):
        kw, kb = jax.random.split(k)
        bound = 1.0 / jnp.sqrt(jnp.float32(fan_in))
        w = jax.random.uniform(kw, (fan_in, fan_out), jnp.float32, -bound, bound)
        b = jax.random.uniform(kb, (1, fan_out), jnp.float32, -bound, bound)
        return w, b

    k1, k2, k3, k41, k42 = jax.random.split(key, 5)
    w1, b1 = linear(k1, input_size, fc1_size)
    w2, b2 = linear(k2, fc1_size, fc2_size)
    w3, b3 = linear(k3, fc2_size, fc3_size)
    w41, b41 = linear(k41, fc3_size, output_size)
    w42, b42 = linear(k42, fc3_size, output_size)
    return dict(w1=w1, b1=b1, w2=w2, b2=b2, w3=w3, b3=b3,
                w41=w41, b41=b41, w42=w42, b42=b42)


def reference_forward(x, p):
    relu = lambda v: jnp.maximum(v, 0.0)
    h1 = relu(x @ p["w1"] + p["b1"])
    h2 = relu(h1 @ p["w2"] + p["b2"])
    h3 = relu(h2 @ p["w3"] + p["b3"])
    return h3 @ p["w41"] + p["b41"], h3 @ p["w42"] + p["b42"]


if __name__ == "__main__":
    # Small shapes consistent with the module: fingerprint -> latent (mu, logvar).
    batch = 16
    input_size = 128
    fc1_size = 64
    fc2_size = 64
    fc3_size = 64
    output_size = 32

    key = jax.random.PRNGKey(0)
    kx, kp = jax.random.split(key)
    x = jax.random.normal(kx, (batch, input_size), jnp.float32)
    params = init_params(kp, input_size, fc1_size, fc2_size, fc3_size, output_size)
    mu_ref, logvar_ref = reference_forward(x, params)

    # Exactness check: f32 compute path matches the reference tightly.
    packed_f32 = pack_params(params, compute_dtype=jnp.float32)
    mu32, logvar32 = vae_encoder_forward(x, packed_f32, out_size=output_size)
    jax.block_until_ready((mu32, logvar32))
    assert mu32.shape == mu_ref.shape and logvar32.shape == logvar_ref.shape
    assert jnp.allclose(mu32, mu_ref, atol=1e-4, rtol=1e-4)
    assert jnp.allclose(logvar32, logvar_ref, atol=1e-4, rtol=1e-4)

    # Default fast path: bf16 weights / x / output slab, f32 accumulation.
    packed_bf16 = pack_params(params)            # compute_dtype=bfloat16 (default)
    mu, logvar = vae_encoder_forward(x, packed_bf16, out_size=output_size)
    jax.block_until_ready((mu, logvar))
    assert mu.shape == mu_ref.shape and logvar.shape == logvar_ref.shape
    assert jnp.allclose(mu, mu_ref, atol=5e-2, rtol=5e-2)
    assert jnp.allclose(logvar, logvar_ref, atol=5e-2, rtol=5e-2)

    print("KERNEL_OK")
</pallas_src>

<mosaic_0001>
module attributes {stable_mosaic.version = 11 : i64} {
  func.func @kernel(%arg0: i32, %arg1: memref<16x128xf32, #tpu.memory_space<vmem>>, %arg2: memref<128x128xf32, #tpu.memory_space<vmem>>, %arg3: memref<128x128xf32, #tpu.memory_space<vmem>>, %arg4: memref<128x128xf32, #tpu.memory_space<vmem>>, %arg5: memref<128x128xf32, #tpu.memory_space<vmem>>, %arg6: memref<4x128xf32, #tpu.memory_space<vmem>>, %arg7: memref<16x128xf32, #tpu.memory_space<vmem>>) attributes {dimension_semantics = [#tpu.dimension_semantics<parallel>], iteration_bounds = array<i64: 1>, scalar_prefetch = 0 : i64, scratch_operands = 0 : i64, tpu.core_type = #tpu.core_type<tc>, window_params = [{transform_indices = @transform_0, window_bounds = array<i64: 16, 128>}, {pipeline_mode = #tpu.pipeline_mode<synchronous>, transform_indices = @transform_1, window_bounds = array<i64: 128, 128>}, {pipeline_mode = #tpu.pipeline_mode<synchronous>, transform_indices = @transform_2, window_bounds = array<i64: 128, 128>}, {pipeline_mode = #tpu.pipeline_mode<synchronous>, transform_indices = @transform_3, window_bounds = array<i64: 128, 128>}, {pipeline_mode = #tpu.pipeline_mode<synchronous>, transform_indices = @transform_4, window_bounds = array<i64: 128, 128>}, {pipeline_mode = #tpu.pipeline_mode<synchronous>, transform_indices = @transform_5, window_bounds = array<i64: 4, 128>}, {transform_indices = @transform_6, window_bounds = array<i64: 16, 128>}]} {
    %c0 = arith.constant 0 : index
    %c0_0 = arith.constant 0 : index
    %0 = vector.load %arg6[%c0, %c0_0] : memref<4x128xf32, #tpu.memory_space<vmem>>, vector<4x128xf32>
    %c0_1 = arith.constant 0 : index
    %c0_2 = arith.constant 0 : index
    %1 = vector.load %arg1[%c0_1, %c0_2] : memref<16x128xf32, #tpu.memory_space<vmem>>, vector<16x128xf32>
    %c0_3 = arith.constant 0 : index
    %c0_4 = arith.constant 0 : index
    %2 = vector.load %arg2[%c0_3, %c0_4] : memref<128x128xf32, #tpu.memory_space<vmem>>, vector<128x128xf32>
    %cst = arith.constant dense<0.000000e+00> : vector<16x128xf32>
    %3 = tpu.matmul %1, %2, %cst {dimension_numbers = #tpu.dot_dimension_numbers<[1], [0], [0], [1], [0, 0, 1, 1], [], []>} : vector<16x128xf32>, vector<128x128xf32>, vector<16x128xf32> -> vector<16x128xf32>
    %4 = vector.extract_strided_slice %0 {offsets = [0, 0], sizes = [1, 128], strides = [1, 1]} : vector<4x128xf32> to vector<1x128xf32>
    %5 = vector.broadcast %4 : vector<1x128xf32> to vector<16x128xf32>
    %6 = arith.addf %3, %5 : vector<16x128xf32>
    %cst_5 = arith.constant 0.000000e+00 : f32
    %7 = vector.broadcast %cst_5 : f32 to vector<16x128xf32>
    %8 = arith.maximumf %6, %7 : vector<16x128xf32>
    %c0_6 = arith.constant 0 : index
    %c0_7 = arith.constant 0 : index
    %9 = vector.load %arg3[%c0_6, %c0_7] : memref<128x128xf32, #tpu.memory_space<vmem>>, vector<128x128xf32>
    %cst_8 = arith.constant dense<0.000000e+00> : vector<16x128xf32>
    %10 = tpu.matmul %8, %9, %cst_8 {dimension_numbers = #tpu.dot_dimension_numbers<[1], [0], [0], [1], [0, 0, 1, 1], [], []>} : vector<16x128xf32>, vector<128x128xf32>, vector<16x128xf32> -> vector<16x128xf32>
    %11 = vector.extract_strided_slice %0 {offsets = [1, 0], sizes = [1, 128], strides = [1, 1]} : vector<4x128xf32> to vector<1x128xf32>
    %12 = vector.broadcast %11 : vector<1x128xf32> to vector<16x128xf32>
    %13 = arith.addf %10, %12 : vector<16x128xf32>
    %cst_9 = arith.constant 0.000000e+00 : f32
    %14 = vector.broadcast %cst_9 : f32 to vector<16x128xf32>
    %15 = arith.maximumf %13, %14 : vector<16x128xf32>
    %c0_10 = arith.constant 0 : index
    %c0_11 = arith.constant 0 : index
    %16 = vector.load %arg4[%c0_10, %c0_11] : memref<128x128xf32, #tpu.memory_space<vmem>>, vector<128x128xf32>
    %cst_12 = arith.constant dense<0.000000e+00> : vector<16x128xf32>
    %17 = tpu.matmul %15, %16, %cst_12 {dimension_numbers = #tpu.dot_dimension_numbers<[1], [0], [0], [1], [0, 0, 1, 1], [], []>} : vector<16x128xf32>, vector<128x128xf32>, vector<16x128xf32> -> vector<16x128xf32>
    %18 = vector.extract_strided_slice %0 {offsets = [2, 0], sizes = [1, 128], strides = [1, 1]} : vector<4x128xf32> to vector<1x128xf32>
    %19 = vector.broadcast %18 : vector<1x128xf32> to vector<16x128xf32>
    %20 = arith.addf %17, %19 : vector<16x128xf32>
    %cst_13 = arith.constant 0.000000e+00 : f32
    %21 = vector.broadcast %cst_13 : f32 to vector<16x128xf32>
    %22 = arith.maximumf %20, %21 : vector<16x128xf32>
    %c0_14 = arith.constant 0 : index
    %c0_15 = arith.constant 0 : index
    %23 = vector.load %arg5[%c0_14, %c0_15] : memref<128x128xf32, #tpu.memory_space<vmem>>, vector<128x128xf32>
    %cst_16 = arith.constant dense<0.000000e+00> : vector<16x128xf32>
    %24 = tpu.matmul %22, %23, %cst_16 {dimension_numbers = #tpu.dot_dimension_numbers<[1], [0], [0], [1], [0, 0, 1, 1], [], []>} : vector<16x128xf32>, vector<128x128xf32>, vector<16x128xf32> -> vector<16x128xf32>
    %25 = vector.extract_strided_slice %0 {offsets = [3, 0], sizes = [1, 128], strides = [1, 1]} : vector<4x128xf32> to vector<1x128xf32>
    %26 = vector.broadcast %25 : vector<1x128xf32> to vector<16x128xf32>
    %27 = arith.addf %24, %26 : vector<16x128xf32>
    %c0_17 = arith.constant 0 : index
    %c0_18 = arith.constant 0 : index
    %28 = vector.load %arg7[%c0_17, %c0_18] : memref<16x128xf32, #tpu.memory_space<vmem>>, vector<16x128xf32>
    tpu.vector_store %arg7[%c0_17, %c0_18], %27 {strides = array<i32>} : memref<16x128xf32, #tpu.memory_space<vmem>>, vector<16x128xf32>,
    return
  }
  func.func @transform_0(%arg0: i32) -> (i32, i32) {
    %c0_i32 = arith.constant 0 : i32
    %c0_i32_0 = arith.constant 0 : i32
    return %arg0, %c0_i32 : i32, i32
  }
  func.func @transform_1(%arg0: i32) -> (i32, i32) {
    %c0_i32 = arith.constant 0 : i32
    %c0_i32_0 = arith.constant 0 : i32
    %c0_i32_1 = arith.constant 0 : i32
    return %c0_i32, %c0_i32_0 : i32, i32
  }
  func.func @transform_2(%arg0: i32) -> (i32, i32) {
    %c0_i32 = arith.constant 0 : i32
    %c0_i32_0 = arith.constant 0 : i32
    %c0_i32_1 = arith.constant 0 : i32
    return %c0_i32, %c0_i32_0 : i32, i32
  }
  func.func @transform_3(%arg0: i32) -> (i32, i32) {
    %c0_i32 = arith.constant 0 : i32
    %c0_i32_0 = arith.constant 0 : i32
    %c0_i32_1 = arith.constant 0 : i32
    return %c0_i32, %c0_i32_0 : i32, i32
  }
  func.func @transform_4(%arg0: i32) -> (i32, i32) {
    %c0_i32 = arith.constant 0 : i32
    %c0_i32_0 = arith.constant 0 : i32
    %c0_i32_1 = arith.constant 0 : i32
    return %c0_i32, %c0_i32_0 : i32, i32
  }
  func.func @transform_5(%arg0: i32) -> (i32, i32) {
    %c0_i32 = arith.constant 0 : i32
    %c0_i32_0 = arith.constant 0 : i32
    %c0_i32_1 = arith.constant 0 : i32
    return %c0_i32, %c0_i32_0 : i32, i32
  }
  func.func @transform_6(%arg0: i32) -> (i32, i32) {
    %c0_i32 = arith.constant 0 : i32
    %c0_i32_0 = arith.constant 0 : i32
    return %arg0, %c0_i32 : i32, i32
  }
}

</mosaic_0001>

<bundles_post_ra>
// kernel: vae_encoder_forward.1
= control target key start
LH: loop header
LB: loop body
LE: loop exit
PB: predicated region body
PF: predicated region fallthrough
CT: control target
= control target key end

     0   :  { %11 = vsyncpa [#allocation3], 0  ;;  %s944_s0 = inlined_call_operand.hbm [shape: f32[16,128], index: 0, kind: input, shape index: {}]   ;;  %s945_s1 = inlined_call_operand.hbm [shape: f32[128,128], index: 1, kind: input, shape index: {}]   ;;  %s946_s2 = inlined_call_operand.hbm [shape: f32[128,128], index: 2, kind: input, shape index: {}]   ;;  %s947_s3 = inlined_call_operand.hbm [shape: f32[128,128], index: 3, kind: input, shape index: {}]   ;;  %s948_s4 = inlined_call_operand.hbm [shape: f32[128,128], index: 4, kind: input, shape index: {}]   ;;  %s949_s5 = inlined_call_operand.hbm [shape: f32[4,128], index: 5, kind: input, shape index: {}]   ;;  %s950_s6 = inlined_call_operand.vmem [shape: f32[16,128], index: 6, kind: output, shape index: {}]  }
   0x1   :  { %12 = vsyncpa [#allocation5], 0 }
   0x2   :  { %13 = vsyncpa [#allocation8], 0 }
   0x3   :  { %14 = vsyncpa [#allocation11], 0  ;;  %s850_s21 = smov [#allocation4]   ;;  %s851_s23 = smov [#allocation7]  }
   0x4   :  { %s32_s22 = sshll.u32 %s850_s21, 4  ;;  %s56_s24 = sshll.u32 %s851_s23, 4  ;;  %s33_s22 = int_to_ptr.vmem [resolvable:$true] %s32_s22  ;;  %s57_s24 = int_to_ptr.vmem [resolvable:$true] %s56_s24 }
   0x5   :  { %s730_s25 = scalar_lea.vmem %s33_s22, 2048  ;;  %p735_p1 = scmp.lt.s32.totalorder %s33_s22, %s33_s22 }
   0x6   :  { %p731_p0 = scmp.ne.s32.totalorder %s33_s22, %s730_s25  ;;  %p736_p2 = scmp.lt.s32.totalorder %s730_s25, %s730_s25 }
   0x8   :  { %p737_p3 = por %p736_p2, %p735_p1 }
   0xa   :  { %p738_p4 = pnand %p737_p3, %p731_p0 }
   0xc   :  { %741 = shalt.err (!%p738_p4)
}
   0xd   :  { %s852_s26 = smov 128   ;;  %s853_s27 = smov 8  }
   0xe   :  { %38 = dma.hbm_to_vmem [thread:$0]  %s945_s1, 2048, %s33_s22, [#allocation5], %s852_s26, %s852_s26, %s853_s27  }
   0xf   :  { %s750_s30 = scalar_lea.vmem %s57_s24, 2048  ;;  %p755_p6 = scmp.lt.s32.totalorder %s57_s24, %s57_s24 }
  0x10   :  { %p751_p5 = scmp.ne.s32.totalorder %s57_s24, %s750_s30  ;;  %p756_p7 = scmp.lt.s32.totalorder %s750_s30, %s750_s30 }
  0x12   :  { %p757_p8 = por %p756_p7, %p755_p6 }
  0x14   :  { %p758_p9 = pnand %p757_p8, %p751_p5 }
  0x16   :  { %761 = shalt.err (!%p758_p9)
}
  0x17   :  { %62 = dma.hbm_to_vmem [thread:$0]  %s947_s3, 2048, %s57_s24, [#allocation8], %s852_s26, %s852_s26, %s853_s27  }
  0x18   :  { %s854_s9 = smov [#allocation2]   ;;  %s855_s11 = smov [#allocation6]  }
  0x19   :  { %s20_s10 = sshll.u32 %s854_s9, 4  ;;  %s44_s12 = sshll.u32 %s855_s11, 4  ;;  %s21_s10 = int_to_ptr.vmem [resolvable:$true] %s20_s10  ;;  %s45_s12 = int_to_ptr.vmem [resolvable:$true] %s44_s12 }
  0x1a   :  { %s770_s1 = scalar_lea.vmem %s21_s10, 256  ;;  %p775_p11 = scmp.lt.s32.totalorder %s21_s10, %s21_s10 }
  0x1b   :  { %p771_p10 = scmp.ne.s32.totalorder %s21_s10, %s770_s1  ;;  %p776_p12 = scmp.lt.s32.totalorder %s770_s1, %s770_s1 }
  0x1d   :  { %p777_p13 = por %p776_p12, %p775_p11 }
  0x1f   :  { %p778_p0 = pnand %p777_p13, %p771_p10 }
  0x21   :  { %781 = shalt.err (!%p778_p0)
}
  0x22   :  { %26 = dma.hbm_to_vmem [thread:$0]  %s944_s0, 256, %s21_s10, [#allocation3], %s852_s26, %s852_s26, %s853_s27  }
  0x23   :  { %s790_s3 = scalar_lea.vmem %s45_s12, 2048  ;;  %p795_p2 = scmp.lt.s32.totalorder %s45_s12, %s45_s12 }
  0x24   :  { %p791_p1 = scmp.ne.s32.totalorder %s45_s12, %s790_s3  ;;  %p796_p3 = scmp.lt.s32.totalorder %s790_s3, %s790_s3 }
  0x26   :  { %p797_p4 = por %p796_p3, %p795_p2 }
  0x28   :  { %p798_p5 = pnand %p797_p4, %p791_p1 }
  0x2a   :  { %801 = shalt.err (!%p798_p5)
}
  0x2b   :  { %50 = dma.hbm_to_vmem [thread:$0]  %s946_s2, 2048, %s45_s12, [#allocation5], %s852_s26, %s852_s26, %s853_s27  }
  0x2c   :  { %s856_s17 = smov [#allocation9]   ;;  %s857_s19 = smov [#allocation10]  }
  0x2d   :  { %s68_s18 = sshll.u32 %s856_s17, 4  ;;  %s81_s20 = sshll.u32 %s857_s19, 4  ;;  %s69_s18 = int_to_ptr.vmem [resolvable:$true] %s68_s18  ;;  %s82_s20 = int_to_ptr.vmem [resolvable:$true] %s81_s20 }
  0x2e   :  { %s810_s0 = scalar_lea.vmem %s69_s18, 2048  ;;  %p815_p7 = scmp.lt.s32.totalorder %s69_s18, %s69_s18 }
  0x2f   :  { %p811_p6 = scmp.ne.s32.totalorder %s69_s18, %s810_s0  ;;  %p816_p8 = scmp.lt.s32.totalorder %s810_s0, %s810_s0 }
  0x31   :  { %p817_p9 = por %p816_p8, %p815_p7 }
  0x33   :  { %p818_p10 = pnand %p817_p9, %p811_p6 }
  0x35   :  { %821 = shalt.err (!%p818_p10)
}
  0x36   :  { %74 = dma.hbm_to_vmem [thread:$0]  %s948_s4, 2048, %s69_s18, [#allocation8], %s852_s26, %s852_s26, %s853_s27  }
  0x37   :  { %s830_s2 = scalar_lea.vmem %s82_s20, 64  ;;  %p835_p12 = scmp.lt.s32.totalorder %s82_s20, %s82_s20 }
  0x38   :  { %p831_p11 = scmp.ne.s32.totalorder %s82_s20, %s830_s2  ;;  %p836_p13 = scmp.lt.s32.totalorder %s830_s2, %s830_s2 }
  0x3a   :  { %p837_p0 = por %p836_p13, %p835_p12 }
  0x3c   :  { %p838_p1 = pnand %p837_p0, %p831_p11 }
  0x3e   :  { %841 = shalt.err (!%p838_p1)
}
  0x3f   :  { %84 = dma.hbm_to_vmem [thread:$0]  %s949_s5, 64, %s82_s20, [#allocation11]  }
  0x40   :  { %842 = dma.done.wait [#allocation3], 256  }
  0x41   :  { %843 = vsyncadd [#allocation3], 4294967040 }
  0x42   :  { %844 = dma.done.wait [#allocation5], 4096  }
  0x43   :  { %845 = vsyncadd [#allocation5], 4294963200 }
  0x44   :  { %846 = dma.done.wait [#allocation8], 4096  }
  0x45   :  { %847 = vsyncadd [#allocation8], 4294963200 }
  0x46   :  { %848 = dma.done.wait [#allocation11], 64  }
  0x47   :  { %849 = vsyncadd [#allocation11], 4294967232  ;;  %v121_v0 = vld [vmem:[#allocation4 + $0x78] sm:$0xff]  ;;  %v120_v1 = vld [vmem:[#allocation4 + $0x70] sm:$0xff]  ;;  %v122_v46 = vlaneseq }
  0x48   :  { %574 = vmatprep.subr.mxu0 %v121_v0  ;;  %v119_v2 = vld [vmem:[#allocation4 + $0x68] sm:$0xff]  ;;  %v118_v3 = vld [vmem:[#allocation4 + $0x60] sm:$0xff]  ;;  %v104_v4 = vld [vmem:[#allocation2] sm:$0xff] }
  0x49   :  { %575 = vmatpush3.msra.mxu0 %v121_v0  ;;  %v117_v5 = vld [vmem:[#allocation4 + $0x58] sm:$0xff]  ;;  %606 = vmatprep.mubr.f32.mxu0 %v104_v4  ;;  %v217_v7 = vld [vmem:[#allocation6 + $0x70] sm:$0xff]  ;;  %v216_v9 = vld [vmem:[#allocation6 + $0x68] sm:$0xff]  ;;  %v926_v47 = vshrl.u32 %v122_v46, 7 }
  0x4a   :  { %576 = vmatprep.subr.mxu0 %v120_v1  ;;  %v218_v6 = vld [vmem:[#allocation6 + $0x78] sm:$0xff]  ;;  %v116_v8 = vld [vmem:[#allocation4 + $0x50] sm:$0xff]  ;;  %v115_v10 = vld [vmem:[#allocation4 + $0x48] sm:$0xff] }
  0x4b   :  { %577 = vmatpush3.msra.mxu0 %v120_v1  ;;  %609 = vmatprep.subr.mxu1 %v218_v6  ;;  %v215_v11 = vld [vmem:[#allocation6 + $0x60] sm:$0xff]  ;;  %v214_v13 = vld [vmem:[#allocation6 + $0x58] sm:$0xff]  ;;  %v213_v15 = vld [vmem:[#allocation6 + $0x50] sm:$0xff]  ;;  %v124_v48 = vsub.s32 0, %v926_v47 }
  0x4c   :  { %578 = vmatprep.subr.mxu0 %v119_v2  ;;  %610 = vmatpush3.msra.mxu1 %v218_v6  ;;  %v114_v12 = vld [vmem:[#allocation4 + $0x40] sm:$0xff]  ;;  %v113_v14 = vld [vmem:[#allocation4 + $0x38] sm:$0xff]  ;;  %v112_v16 = vld [vmem:[#allocation4 + $0x30] sm:$0xff] }
  0x4d   :  { %579 = vmatpush3.msra.mxu0 %v119_v2  ;;  %611 = vmatprep.subr.mxu1 %v217_v7  ;;  %v212_v17 = vld [vmem:[#allocation6 + $0x48] sm:$0xff]  ;;  %v211_v19 = vld [vmem:[#allocation6 + $0x40] sm:$0xff]  ;;  %v210_v21 = vld [vmem:[#allocation6 + $0x38] sm:$0xff] }
  0x4e   :  { %580 = vmatprep.subr.mxu0 %v118_v3  ;;  %612 = vmatpush3.msra.mxu1 %v217_v7  ;;  %v111_v18 = vld [vmem:[#allocation4 + $0x28] sm:$0xff]  ;;  %v110_v20 = vld [vmem:[#allocation4 + $0x20] sm:$0xff]  ;;  %v109_v22 = vld [vmem:[#allocation4 + $0x18] sm:$0xff] }
  0x4f   :  { %581 = vmatpush3.msra.mxu0 %v118_v3  ;;  %613 = vmatprep.subr.mxu1 %v216_v9  ;;  %v209_v23 = vld [vmem:[#allocation6 + $0x30] sm:$0xff]  ;;  %v208_v25 = vld [vmem:[#allocation6 + $0x28] sm:$0xff]  ;;  %v207_v27 = vld [vmem:[#allocation6 + $0x20] sm:$0xff] }
  0x50   :  { %582 = vmatprep.subr.mxu0 %v117_v5  ;;  %614 = vmatpush3.msra.mxu1 %v216_v9  ;;  %v108_v24 = vld [vmem:[#allocation4 + $0x10] sm:$0xff]  ;;  %v107_v26 = vld [vmem:[#allocation4 + $0x8] sm:$0xff]  ;;  %v106_v28 = vld [vmem:[#allocation4] sm:$0xff]  ;;  %v221_v9 = vsub.s32 1, %v926_v47 }
  0x51   :  { %583 = vmatpush3.msra.mxu0 %v117_v5  ;;  %615 = vmatprep.subr.mxu1 %v215_v11  ;;  %v105_v29 = vld [vmem:[#allocation2 + $0x8] sm:$0xff]  ;;  %v205_v31 = vld [vmem:[#allocation6 + $0x10] sm:$0xff]  ;;  %v204_v32 = vld [vmem:[#allocation6 + $0x8] sm:$0xff] }
  0x52   :  { %584 = vmatprep.subr.mxu0 %v116_v8  ;;  %616 = vmatpush3.msra.mxu1 %v215_v11  ;;  %v206_v30 = vld [vmem:[#allocation6 + $0x18] sm:$0xff]  ;;  %v203_v33 = vld [vmem:[#allocation6] sm:$0xff]  ;;  %v314_v35 = vld [vmem:[#allocation7 + $0x70] sm:$0xff] }
  0x53   :  { %585 = vmatpush3.msra.mxu0 %v116_v8  ;;  %617 = vmatprep.subr.mxu1 %v214_v13  ;;  %v315_v34 = vld [vmem:[#allocation7 + $0x78] sm:$0xff]  ;;  %v313_v36 = vld [vmem:[#allocation7 + $0x68] sm:$0xff]  ;;  %v312_v37 = vld [vmem:[#allocation7 + $0x60] sm:$0xff] }
  0x54   :  { %586 = vmatprep.subr.mxu0 %v115_v10  ;;  %618 = vmatpush3.msra.mxu1 %v214_v13  ;;  %v311_v38 = vld [vmem:[#allocation7 + $0x58] sm:$0xff]  ;;  %v310_v39 = vld [vmem:[#allocation7 + $0x50] sm:$0xff]  ;;  %v309_v40 = vld [vmem:[#allocation7 + $0x48] sm:$0xff] }
  0x55   :  { %587 = vmatpush3.msra.mxu0 %v115_v10  ;;  %619 = vmatprep.subr.mxu1 %v213_v15  ;;  %v308_v41 = vld [vmem:[#allocation7 + $0x40] sm:$0xff]  ;;  %v307_v42 = vld [vmem:[#allocation7 + $0x38] sm:$0xff]  ;;  %v306_v43 = vld [vmem:[#allocation7 + $0x30] sm:$0xff] }
  0x56   :  { %588 = vmatprep.subr.mxu0 %v114_v12  ;;  %620 = vmatpush3.msra.mxu1 %v213_v15  ;;  %v305_v44 = vld [vmem:[#allocation7 + $0x28] sm:$0xff]  ;;  %v304_v45 = vld [vmem:[#allocation7 + $0x20] sm:$0xff]  ;;  %v303_v57 = vld [vmem:[#allocation7 + $0x18] sm:$0xff] }
  0x57   :  { %589 = vmatpush3.msra.mxu0 %v114_v12  ;;  %621 = vmatprep.subr.mxu1 %v212_v17  ;;  %v929_v49 = vld [vmem:[#allocation10] sm:$0xf]  ;;  %v302_v58 = vld [vmem:[#allocation7 + $0x10] sm:$0xff]  ;;  %v301_v59 = vld [vmem:[#allocation7 + $0x8] sm:$0xff] }
  0x58   :  { %590 = vmatprep.subr.mxu0 %v113_v14  ;;  %622 = vmatpush3.msra.mxu1 %v212_v17  ;;  %v125_v50 = vrot.slane %v929_v49, %v124_v48  ;;  %v300_v60 = vld [vmem:[#allocation7] sm:$0xff]  ;;  %v412_v61 = vld [vmem:[#allocation9 + $0x78] sm:$0xff]  ;;  %v411_v62 = vld [vmem:[#allocation9 + $0x70] sm:$0xff]  ;;  %v222_v10 = vrot.slane %v929_v49, %v221_v9 }
  0x59   :  { %591 = vmatpush3.msra.mxu0 %v113_v14  ;;  %623 = vmatprep.subr.mxu1 %v211_v19  ;;  %v410_v63 = vld [vmem:[#allocation9 + $0x68] sm:$0xff]  ;;  %v409_v0 = vld [vmem:[#allocation9 + $0x60] sm:$0xff]  ;;  %v408_v1 = vld [vmem:[#allocation9 + $0x58] sm:$0xff] }
  0x5a   :  { %592 = vmatprep.subr.mxu0 %v112_v16  ;;  %624 = vmatpush3.msra.mxu1 %v211_v19  ;;  %v407_v2 = vld [vmem:[#allocation9 + $0x50] sm:$0xff]  ;;  %v406_v3 = vld [vmem:[#allocation9 + $0x48] sm:$0xff]  ;;  %v405_v4 = vld [vmem:[#allocation9 + $0x40] sm:$0xff] }
  0x5b   :  { %593 = vmatpush3.msra.mxu0 %v112_v16  ;;  %625 = vmatprep.subr.mxu1 %v210_v21  ;;  %v404_v5 = vld [vmem:[#allocation9 + $0x38] sm:$0xff]  ;;  %v403_v6 = vld [vmem:[#allocation9 + $0x30] sm:$0xff]  ;;  %v402_v7 = vld [vmem:[#allocation9 + $0x28] sm:$0xff] }
  0x5c   :  { %594 = vmatprep.subr.mxu0 %v111_v18  ;;  %626 = vmatpush3.msra.mxu1 %v210_v21  ;;  %v401_v8 = vld [vmem:[#allocation9 + $0x20] sm:$0xff]  ;;  %v400_v17 = vld [vmem:[#allocation9 + $0x18] sm:$0xff]  ;;  %v398_v19 = vld [vmem:[#allocation9 + $0x8] sm:$0xff]  ;;  %v318_v21 = vsub.s32 2, %v926_v47 }
  0x5d   :  { %595 = vmatpush3.msra.mxu0 %v111_v18  ;;  %627 = vmatprep.subr.mxu1 %v209_v23  ;;  %v399_v18 = vld [vmem:[#allocation9 + $0x10] sm:$0xff] }
  0x5e   :  { %596 = vmatprep.subr.mxu0 %v110_v20  ;;  %628 = vmatpush3.msra.mxu1 %v209_v23 }
  0x5f   :  { %597 = vmatpush3.msra.mxu0 %v110_v20  ;;  %629 = vmatprep.subr.mxu1 %v208_v25  ;;  %v397_v20 = vld [vmem:[#allocation9] sm:$0xff] }
  0x60   :  { %598 = vmatprep.subr.mxu0 %v109_v22  ;;  %630 = vmatpush3.msra.mxu1 %v208_v25 }
  0x61   :  { %599 = vmatpush3.msra.mxu0 %v109_v22  ;;  %631 = vmatprep.subr.mxu1 %v207_v27  ;;  %v319_v22 = vrot.slane %v929_v49, %v318_v21 }
  0x62   :  { %600 = vmatprep.subr.mxu0 %v108_v24  ;;  %632 = vmatpush3.msra.mxu1 %v207_v27 }
  0x63   :  { %601 = vmatpush3.msra.mxu0 %v108_v24  ;;  %633 = vmatprep.subr.mxu1 %v206_v30 }
  0x64   :  { %602 = vmatprep.subr.mxu0 %v107_v26  ;;  %634 = vmatpush3.msra.mxu1 %v206_v30 }
  0x65   :  { %603 = vmatpush3.msra.mxu0 %v107_v26  ;;  %635 = vmatprep.subr.mxu1 %v205_v31 }
  0x66   :  { %604 = vmatprep.subr.mxu0 %v106_v28  ;;  %636 = vmatpush3.msra.mxu1 %v205_v31 }
  0x67   :  { %605 = vmatpush3.msra.mxu0 %v106_v28  ;;  %637 = vmatprep.subr.mxu1 %v204_v32 }
  0x68   :  { %607 = vmatmul.mubr.f32.vlgmr.msra.gmra.mxu0 %v105_v29  ;;  %638 = vmatpush3.msra.mxu1 %v204_v32  ;;  %v415_v29 = vsub.s32 3, %v926_v47 }
  0x69   :  { %639 = vmatprep.subr.mxu1 %v203_v33  ;;  %644 = vmatprep.subr.mxu0 %v315_v34 }
  0x6a   :  { %640 = vmatpush3.msra.mxu1 %v203_v33  ;;  %645 = vmatpush3.msra.mxu0 %v315_v34  ;;  %v416_v30 = vrot.slane %v929_v49, %v415_v29 }
  0x6b   :  { %646 = vmatprep.subr.mxu0 %v314_v35  ;;  %679 = vmatprep.subr.mxu1 %v412_v61 }
  0x6c   :  { %647 = vmatpush3.msra.mxu0 %v314_v35 }
  0x6d   :  { %648 = vmatprep.subr.mxu0 %v313_v36 }
  0x6e   :  { %649 = vmatpush3.msra.mxu0 %v313_v36 }
  0x6f   :  { %650 = vmatprep.subr.mxu0 %v312_v37 }
  0x70   :  { %651 = vmatpush3.msra.mxu0 %v312_v37 }
  0x71   :  { %652 = vmatprep.subr.mxu0 %v311_v38 }
  0x72   :  { %653 = vmatpush3.msra.mxu0 %v311_v38 }
  0x73   :  { %654 = vmatprep.subr.mxu0 %v310_v39 }
  0x74   :  { %655 = vmatpush3.msra.mxu0 %v310_v39 }
  0x75   :  { %656 = vmatprep.subr.mxu0 %v309_v40 }
  0x76   :  { %657 = vmatpush3.msra.mxu0 %v309_v40 }
  0x77   :  { %658 = vmatprep.subr.mxu0 %v308_v41 }
  0x78   :  { %659 = vmatpush3.msra.mxu0 %v308_v41 }
  0x79   :  { %660 = vmatprep.subr.mxu0 %v307_v42 }
  0x7a   :  { %661 = vmatpush3.msra.mxu0 %v307_v42 }
  0x7b   :  { %662 = vmatprep.subr.mxu0 %v306_v43 }
  0x7c   :  { %663 = vmatpush3.msra.mxu0 %v306_v43 }
  0x7d   :  { %664 = vmatprep.subr.mxu0 %v305_v44 }
  0x7e   :  { %665 = vmatpush3.msra.mxu0 %v305_v44 }
  0x7f   :  { %666 = vmatprep.subr.mxu0 %v304_v45 }
  0x80   :  { %667 = vmatpush3.msra.mxu0 %v304_v45 }
  0x81   :  { %668 = vmatprep.subr.mxu0 %v303_v57 }
  0x82   :  { %669 = vmatpush3.msra.mxu0 %v303_v57 }
  0x83   :  { %670 = vmatprep.subr.mxu0 %v302_v58 }
  0x84   :  { %671 = vmatpush3.msra.mxu0 %v302_v58 }
  0x85   :  { %672 = vmatprep.subr.mxu0 %v301_v59 }
  0x86   :  { %673 = vmatpush3.msra.mxu0 %v301_v59 }
  0x87   :  { %674 = vmatprep.subr.mxu0 %v300_v60 }
  0x88   :  { %675 = vmatpush3.msra.mxu0 %v300_v60 }
 0x128   :  { %v608_v51 = vpop.f32.mrf.mxu0 }
 0x129   :  { %v198_v52 = vadd.f32 %v608_v51, %v125_v50 }
 0x12a   :  { %v192_v53 = vpop.f32.mrf.mxu0 }
 0x12b   :  { %v193_v54 = vadd.f32 %v192_v53, %v125_v50  ;;  %v202_v56 = vmax.f32 %v198_v52, 0.0 }
 0x12d   :  { %v201_v55 = vmax.f32 %v193_v54, 0.0 }
 0x12f   :  { %641 = vmatprep.mubr.f32.mxu1 %v201_v55 }
 0x130   :  { %642 = vmatmul.mubr.f32.vlgmr.msra.gmra.mxu1 %v202_v56 }
 0x131   :  { %680 = vmatpush3.msra.mxu1 %v412_v61 }
 0x132   :  { %681 = vmatprep.subr.mxu1 %v411_v62 }
 0x133   :  { %682 = vmatpush3.msra.mxu1 %v411_v62 }
 0x134   :  { %683 = vmatprep.subr.mxu1 %v410_v63 }
 0x135   :  { %684 = vmatpush3.msra.mxu1 %v410_v63 }
 0x136   :  { %685 = vmatprep.subr.mxu1 %v409_v0 }
 0x137   :  { %686 = vmatpush3.msra.mxu1 %v409_v0 }
 0x138   :  { %687 = vmatprep.subr.mxu1 %v408_v1 }
 0x139   :  { %688 = vmatpush3.msra.mxu1 %v408_v1 }
 0x13a   :  { %689 = vmatprep.subr.mxu1 %v407_v2 }
 0x13b   :  { %690 = vmatpush3.msra.mxu1 %v407_v2 }
 0x13c   :  { %691 = vmatprep.subr.mxu1 %v406_v3 }
 0x13d   :  { %692 = vmatpush3.msra.mxu1 %v406_v3 }
 0x13e   :  { %693 = vmatprep.subr.mxu1 %v405_v4 }
 0x13f   :  { %694 = vmatpush3.msra.mxu1 %v405_v4 }
 0x140   :  { %695 = vmatprep.subr.mxu1 %v404_v5 }
 0x141   :  { %696 = vmatpush3.msra.mxu1 %v404_v5 }
 0x142   :  { %697 = vmatprep.subr.mxu1 %v403_v6 }
 0x143   :  { %698 = vmatpush3.msra.mxu1 %v403_v6 }
 0x144   :  { %699 = vmatprep.subr.mxu1 %v402_v7 }
 0x145   :  { %700 = vmatpush3.msra.mxu1 %v402_v7 }
 0x146   :  { %701 = vmatprep.subr.mxu1 %v401_v8 }
 0x147   :  { %702 = vmatpush3.msra.mxu1 %v401_v8 }
 0x148   :  { %703 = vmatprep.subr.mxu1 %v400_v17 }
 0x149   :  { %704 = vmatpush3.msra.mxu1 %v400_v17 }
 0x14a   :  { %705 = vmatprep.subr.mxu1 %v399_v18 }
 0x14b   :  { %706 = vmatpush3.msra.mxu1 %v399_v18 }
 0x14c   :  { %707 = vmatprep.subr.mxu1 %v398_v19 }
 0x14d   :  { %708 = vmatpush3.msra.mxu1 %v398_v19 }
 0x14e   :  { %709 = vmatprep.subr.mxu1 %v397_v20 }
 0x14f   :  { %710 = vmatpush3.msra.mxu1 %v397_v20 }
 0x1f0   :  { %v643_v11 = vpop.f32.mrf.mxu1 }
 0x1f1   :  { %v295_v12 = vadd.f32 %v643_v11, %v222_v10 }
 0x1f2   :  { %v289_v13 = vpop.f32.mrf.mxu1 }
 0x1f3   :  { %v290_v14 = vadd.f32 %v289_v13, %v222_v10  ;;  %v299_v16 = vmax.f32 %v295_v12, 0.0 }
 0x1f5   :  { %v298_v15 = vmax.f32 %v290_v14, 0.0 }
 0x1f7   :  { %676 = vmatprep.mubr.f32.mxu0 %v298_v15 }
 0x1f8   :  { %677 = vmatmul.mubr.f32.vlgmr.msra.gmra.mxu0 %v299_v16 }
 0x2b8   :  { %v678_v23 = vpop.f32.mrf.mxu0 }
 0x2b9   :  { %v392_v24 = vadd.f32 %v678_v23, %v319_v22 }
 0x2ba   :  { %v386_v25 = vpop.f32.mrf.mxu0 }
 0x2bb   :  { %v387_v26 = vadd.f32 %v386_v25, %v319_v22  ;;  %v396_v28 = vmax.f32 %v392_v24, 0.0 }
 0x2bd   :  { %v395_v27 = vmax.f32 %v387_v26, 0.0 }
 0x2bf   :  { %711 = vmatprep.mubr.f32.mxu1 %v395_v27 }
 0x2c0   :  { %712 = vmatmul.mubr.f32.vlgmr.msra.gmra.mxu1 %v396_v28 }
 0x380   :  { %v713_v31 = vpop.f32.mrf.mxu1 }
 0x381   :  { %v489_v32 = vadd.f32 %v713_v31, %v416_v30 }
 0x382   :  { %v483_v33 = vpop.f32.mrf.mxu1 }
 0x383   :  { %493 = vst [vmem:[%s950_s6 + $0x8] sm:$0xff] %v489_v32  ;;  %v484_v34 = vadd.f32 %v483_v33, %v416_v30 }
 0x385   :  { %492 = vst [vmem:[%s950_s6] sm:$0xff] %v484_v34 }
 0x386   :  { %498 = vsyncpa [#allocation3], 1 }
 0x387   :  { %499 = vsyncpa [#allocation5], 1 }
 0x388   :  { %500 = vsyncpa [#allocation8], 1 }
 0x389   :  { %501 = vsyncpa [#allocation11], 1 }

</bundles_post_ra>
